<compile_context>
chip_gen: v7x
topology: tpu7x:2x2x1
jax: 0.10.0
libtpu: 0.0.40
codegen_flags: <defaults>
</compile_context>

<pallas_src>
import functools
import math

import jax
import jax.numpy as jnp
import numpy as np
from jax import lax
from jax.experimental import pallas as pl
from jax.experimental.pallas import tpu as pltpu

LN2 = 0.6931471805599453
LANES = 128


def _pitch_tracker_kernel(
    pitch_ref,       # f32 (1, 1, block)  VMEM   one pitch block per grid step
    buf_in_ref,      # f32 (R, 128)       VMEM   circular buffer of log2(pitch)
    state_in_ref,    # i32 (2,)           SMEM   [buffer_idx, current_buffer_size]
    stats_in_ref,    # f32 (2,)           SMEM   [source_log_mean, source_log_std]
    out_ref,         # f32 (1, 1, block)  VMEM
    buf_out_ref,     # f32 (R, 128)       VMEM
    state_out_ref,   # i32 (2,)           SMEM
    stats_out_ref,   # f32 (2,)           SMEM
    buf_sc,          # f32 (R, 128)       VMEM scratch: running buffer across grid
    state_sc,        # i32 (2,)           SMEM scratch
    stats_sc,        # f32 (2,)           SMEM scratch
    *,
    block,
    buffer_size,
    buf_rows,
    target_log_mean,
    target_log_std,
):
    step = pl.program_id(0)

    # ---- init running state from the inputs on the first grid step ----------
    @pl.when(step == 0)
    def _():
        buf_sc[...] = buf_in_ref[...]
        state_sc[0] = state_in_ref[0]
        state_sc[1] = state_in_ref[1]
        stats_sc[0] = stats_in_ref[0]
        stats_sc[1] = stats_in_ref[1]

    pitch = pitch_ref[0]                               # (1, block)
    valid = pitch > 0.0
    validf = valid.astype(jnp.float32)
    # single vectorized log2 over the block, reused for buffer + output paths
    log2p = jnp.log2(jnp.where(valid, pitch, 1.0))     # 0.0 for unvoiced frames

    # ---- closed-form circular-buffer update (no serial scatter loop) --------
    # rank_i = number of valid elements strictly before i (exclusive cumsum),
    # computed as validf @ strict-lower-triangular 0/1 matrix on the MXU (exact).
    tri = (lax.broadcasted_iota(jnp.int32, (block, block), 0)
           < lax.broadcasted_iota(jnp.int32, (block, block), 1)).astype(jnp.float32)
    rank = jnp.dot(validf, tri, preferred_element_type=jnp.float32)   # (1, block)
    nvalid = jnp.sum(validf).astype(jnp.int32)

    idx0 = state_sc[0]
    cnt0 = state_sc[1]

    # target flat slot per element (distinct within a block since block<=buffer)
    slot = idx0 + rank.astype(jnp.int32)
    slot = jnp.where(slot >= buffer_size, slot - buffer_size, slot)   # circular wrap
    row = jnp.right_shift(slot, 7)                      # slot // 128
    col = jnp.bitwise_and(slot, LANES - 1)              # slot % 128

    # Factored one-hot scatter on the MXU:
    #   scat[r, c] = sum_i lhs[r, i] * colhot[c, i]
    # rows [0, R) carry the log2 values, rows [R, 2R) carry the written-mask.
    two_r = 2 * buf_rows
    r_iota = lax.broadcasted_iota(jnp.int32, (two_r, block), 0)
    lhs = (jnp.where(r_iota == row, log2p * validf, 0.0)
           + jnp.where(r_iota == row + buf_rows, validf, 0.0))        # (2R, block)
    colhot = (lax.broadcasted_iota(jnp.int32, (LANES, block), 0)
              == col).astype(jnp.float32)                              # (128, block)
    scat = lax.dot_general(
        lhs, colhot,
        dimension_numbers=(((1,), (1,)), ((), ())),
        preferred_element_type=jnp.float32,
        precision=lax.Precision.HIGHEST)                               # (2R, 128)
    written = scat[buf_rows:two_r, :] > 0.5
    buf_new = jnp.where(written, scat[0:buf_rows, :], buf_sc[...])
    buf_sc[...] = buf_new

    idx_new = idx0 + nvalid
    idx_new = jnp.where(idx_new >= buffer_size, idx_new - buffer_size, idx_new)
    cnt_new = jnp.minimum(cnt0 + nvalid, buffer_size)
    state_sc[0] = idx_new
    state_sc[1] = cnt_new

    # ---- running source statistics over buffer[:current_buffer_size] --------
    flat = (lax.broadcasted_iota(jnp.int32, (buf_rows, LANES), 0) * LANES
            + lax.broadcasted_iota(jnp.int32, (buf_rows, LANES), 1))
    vmask = (flat < cnt_new).astype(jnp.float32)
    cntf = cnt_new.astype(jnp.float32)
    mean_buf = jnp.sum(buf_new * vmask) / jnp.maximum(cntf, 1.0)
    centered = (buf_new - mean_buf) * vmask
    std_buf = jnp.sqrt(jnp.sum(centered * centered)
                       / jnp.maximum(cntf - 1.0, 1.0))    # unbiased, like torch.std

    has_valid = nvalid > 0
    prior_mean = stats_sc[0]
    prior_std = stats_sc[1]
    new_mean = jnp.where(has_valid, mean_buf, prior_mean)
    new_std = jnp.where(cnt_new > 1, std_buf, prior_std)
    new_std = jnp.where(has_valid, jnp.maximum(new_std, 1e-7), prior_std)
    stats_sc[0] = new_mean
    stats_sc[1] = new_std

    # ---- pitch register shift (elementwise hot path, reuses log2p) ----------
    normalized = (log2p - new_mean) / new_std
    scaled_log = normalized * target_log_std + target_log_mean
    # TODO(synk): jnp.exp2 would save one vmul; exp(x*ln2) used for guaranteed lowering.
    shifted = jnp.exp(scaled_log * LN2)                  # 2 ** scaled_log
    out_ref[0] = jnp.where(valid, shifted, 0.0)

    # ---- write final state to the outputs on the last grid step -------------
    @pl.when(step == pl.num_programs(0) - 1)
    def _():
        buf_out_ref[...] = buf_sc[...]
        state_out_ref[0] = state_sc[0]
        state_out_ref[1] = state_sc[1]
        stats_out_ref[0] = stats_sc[0]
        stats_out_ref[1] = stats_sc[1]


class PitchRegisterTrackerPallas:
    """JAX/Pallas port of PitchRegisterTracker (state carried as JAX arrays)."""

    def __init__(self, target_mean: float, target_std: float, buffer_size: int = 1000):
        self.target_log_mean = math.log2(target_mean)
        self.target_log_std = target_std / (target_mean * 0.693147)
        self.buffer_size = buffer_size
        self.buf_rows = (buffer_size + LANES - 1) // LANES   # dense (R, 128) packing
        # persistent state (mirrors the torch module attributes)
        self.source_buffer = jnp.zeros((self.buf_rows, LANES), jnp.float32)
        self.state = jnp.zeros((2,), jnp.int32)              # [buffer_idx, current_buffer_size]
        self.stats = jnp.array([0.0, 1.0], jnp.float32)      # [source_log_mean, source_log_std]
        self._fn_cache = {}

    def _get_fn(self, num_blocks, block):
        key = (num_blocks, block)
        fn = self._fn_cache.get(key)
        if fn is not None:
            return fn

        kernel = functools.partial(
            _pitch_tracker_kernel,
            block=block,
            buffer_size=self.buffer_size,
            buf_rows=self.buf_rows,
            target_log_mean=self.target_log_mean,
            target_log_std=self.target_log_std,
        )

        smem_spec = pl.BlockSpec(memory_space=pltpu.MemorySpace.SMEM)
        grid_spec = pltpu.PrefetchScalarGridSpec(
            num_scalar_prefetch=0,
            grid=(num_blocks,),
            in_specs=[
                pl.BlockSpec((1, 1, block), lambda b: (b, 0, 0)),
                pl.BlockSpec((self.buf_rows, LANES), lambda b: (0, 0)),
                smem_spec,
                smem_spec,
            ],
            out_specs=(
                pl.BlockSpec((1, 1, block), lambda b: (b, 0, 0)),
                pl.BlockSpec((self.buf_rows, LANES), lambda b: (0, 0)),
                smem_spec,
                smem_spec,
            ),
            scratch_shapes=[
                pltpu.VMEM((self.buf_rows, LANES), jnp.float32),
                pltpu.SMEM((2,), jnp.int32),
                pltpu.SMEM((2,), jnp.float32),
            ],
        )

        fn = pl.pallas_call(
            kernel,
            out_shape=(
                jax.ShapeDtypeStruct((num_blocks, 1, block), jnp.float32),
                jax.ShapeDtypeStruct((self.buf_rows, LANES), jnp.float32),
                jax.ShapeDtypeStruct((2,), jnp.int32),
                jax.ShapeDtypeStruct((2,), jnp.float32),
            ),
            grid_spec=grid_spec,
            compiler_params=pltpu.CompilerParams(
                dimension_semantics=("arbitrary",)),   # state carry is sequential
            # reuse the persistent-state HBM buffers instead of fresh allocs
            input_output_aliases={1: 1, 2: 2, 3: 3},
        )
        fn = jax.jit(fn)
        self._fn_cache[key] = fn
        return fn

    def __call__(self, pitch_values):
        """Accepts (block,) for one block or (num_blocks, block) for a batched
        sequence of blocks processed sequentially inside one pallas_call."""
        pitch = jnp.asarray(pitch_values, jnp.float32)
        squeeze = pitch.ndim == 1
        if squeeze:
            pitch = pitch[None, :]
        num_blocks, block = pitch.shape
        if block > self.buffer_size:
            # vectorized scatter assumes distinct slots within one block
            raise NotImplementedError("block_size must be <= buffer_size")

        fn = self._get_fn(num_blocks, block)
        out, buf, state, stats = fn(
            pitch.reshape(num_blocks, 1, block),
            self.source_buffer, self.state, self.stats)

        # update persistent state
        self.source_buffer = buf
        self.state = state
        self.stats = stats

        out = out.reshape(num_blocks, block)
        return out[0] if squeeze else out


class _ReferenceTracker:
    """Pure numpy reference mirroring the PyTorch module semantics."""

    def __init__(self, target_mean, target_std, buffer_size=1000):
        self.tlm = math.log2(target_mean)
        self.tls = target_std / (target_mean * 0.693147)
        self.buffer_size = buffer_size
        self.buf = np.zeros(buffer_size, np.float64)
        self.idx = 0
        self.cnt = 0
        self.mean = 0.0
        self.std = 1.0

    def __call__(self, pitch):
        pitch = np.asarray(pitch, np.float64)
        valid = pitch > 0
        vp = pitch[valid]
        if vp.size > 0:
            for p in vp:
                self.buf[self.idx] = math.log2(p)
                self.idx = (self.idx + 1) % self.buffer_size
                self.cnt = min(self.cnt + 1, self.buffer_size)
            vb = self.buf[: self.cnt]
            self.mean = float(vb.mean())
            if vb.size > 1:
                self.std = float(vb.std(ddof=1))
            self.std = max(self.std, 1e-7)
        out = np.zeros_like(pitch)
        if valid.any():
            lp = np.log2(pitch[valid])
            out[valid] = 2.0 ** ((lp - self.mean) / self.std * self.tls + self.tlm)
        return out


if __name__ == "__main__":
    key = jax.random.PRNGKey(0)
    block = 128

    k1, k2, k3, k4 = jax.random.split(key, 4)
    freqs1 = jax.random.uniform(k1, (block,), minval=100.0, maxval=400.0)
    voiced1 = (jax.random.uniform(k2, (block,)) > 0.3).astype(jnp.float32)
    pitch1 = freqs1 * voiced1                           # zeros = unvoiced frames
    freqs2 = jax.random.uniform(k3, (block,), minval=80.0, maxval=500.0)
    voiced2 = (jax.random.uniform(k4, (block,)) > 0.3).astype(jnp.float32)
    pitch2 = freqs2 * voiced2

    # ---- streaming: one block per call, state carried across pallas_calls ---
    tracker = PitchRegisterTrackerPallas(target_mean=220.0, target_std=30.0,
                                         buffer_size=1000)
    ref = _ReferenceTracker(220.0, 30.0, 1000)
    out1 = jax.block_until_ready(tracker(pitch1))
    out2 = jax.block_until_ready(tracker(pitch2))       # second call exercises state
    exp1 = ref(np.asarray(pitch1))
    exp2 = ref(np.asarray(pitch2))
    np.testing.assert_allclose(np.asarray(out1), exp1, rtol=2e-3, atol=1e-2)
    np.testing.assert_allclose(np.asarray(out2), exp2, rtol=2e-3, atol=1e-2)

    # ---- batched: both blocks in ONE pallas_call via the sequential grid ----
    tracker_b = PitchRegisterTrackerPallas(target_mean=220.0, target_std=30.0,
                                           buffer_size=1000)
    out_b = jax.block_until_ready(tracker_b(jnp.stack([pitch1, pitch2])))
    np.testing.assert_allclose(np.asarray(out_b[0]), exp1, rtol=2e-3, atol=1e-2)
    np.testing.assert_allclose(np.asarray(out_b[1]), exp2, rtol=2e-3, atol=1e-2)

    print("KERNEL_OK")
</pallas_src>

<mosaic_0001>
module attributes {stable_mosaic.version = 11 : i64} {
  func.func @_pitch_tracker_kernel(%arg0: i32, %arg1: memref<1x1x128xf32, #tpu.memory_space<vmem>>, %arg2: memref<8x128xf32, #tpu.memory_space<vmem>>, %arg3: memref<2xi32, #tpu.memory_space<smem>>, %arg4: memref<2xf32, #tpu.memory_space<smem>>, %arg5: memref<1x1x128xf32, #tpu.memory_space<vmem>>, %arg6: memref<8x128xf32, #tpu.memory_space<vmem>>, %arg7: memref<2xi32, #tpu.memory_space<smem>>, %arg8: memref<2xf32, #tpu.memory_space<smem>>, %arg9: memref<8x128xf32, #tpu.memory_space<vmem>>, %arg10: memref<2xi32, #tpu.memory_space<smem>>, %arg11: memref<2xf32, #tpu.memory_space<smem>>) attributes {dimension_semantics = [#tpu.dimension_semantics<arbitrary>], iteration_bounds = array<i64: 1>, scalar_prefetch = 0 : i64, scratch_operands = 3 : i64, tpu.core_type = #tpu.core_type<tc>, window_params = [{transform_indices = @transform_0, window_bounds = array<i64: 1, 1, 128>}, {pipeline_mode = #tpu.pipeline_mode<synchronous>, transform_indices = @transform_1, window_bounds = array<i64: 8, 128>}, {transform_indices = @transform_2, window_bounds = array<i64: 2>}, {transform_indices = @transform_3, window_bounds = array<i64: 2>}, {transform_indices = @transform_4, window_bounds = array<i64: 1, 1, 128>}, {pipeline_mode = #tpu.pipeline_mode<synchronous>, transform_indices = @transform_5, window_bounds = array<i64: 8, 128>}, {transform_indices = @transform_6, window_bounds = array<i64: 2>}, {transform_indices = @transform_7, window_bounds = array<i64: 2>}]} {
    %c0_i32 = arith.constant 0 : i32
    %0 = arith.cmpi eq, %arg0, %c0_i32 : i32
    %1 = arith.extui %0 : i1 to i32
    %c0_i32_0 = arith.constant 0 : i32
    %2 = arith.cmpi ne, %1, %c0_i32_0 : i32
    scf.if %2 {
      %c0_42 = arith.constant 0 : index
      %c0_43 = arith.constant 0 : index
      %136 = vector.load %arg2[%c0_42, %c0_43] : memref<8x128xf32, #tpu.memory_space<vmem>>, vector<8x128xf32>
      %c0_44 = arith.constant 0 : index
      %c0_45 = arith.constant 0 : index
      %137 = vector.load %arg9[%c0_44, %c0_45] : memref<8x128xf32, #tpu.memory_space<vmem>>, vector<8x128xf32>
      tpu.vector_store %arg9[%c0_44, %c0_45], %136 {strides = array<i32>} : memref<8x128xf32, #tpu.memory_space<vmem>>, vector<8x128xf32>,
      %c0_46 = arith.constant 0 : index
      %138 = memref.load %arg3[%c0_46] : memref<2xi32, #tpu.memory_space<smem>>
      %c0_47 = arith.constant 0 : index
      %139 = memref.load %arg10[%c0_47] : memref<2xi32, #tpu.memory_space<smem>>
      memref.store %138, %arg10[%c0_47] : memref<2xi32, #tpu.memory_space<smem>>
      %c1_48 = arith.constant 1 : index
      %140 = memref.load %arg3[%c1_48] : memref<2xi32, #tpu.memory_space<smem>>
      %c1_49 = arith.constant 1 : index
      %141 = memref.load %arg10[%c1_49] : memref<2xi32, #tpu.memory_space<smem>>
      memref.store %140, %arg10[%c1_49] : memref<2xi32, #tpu.memory_space<smem>>
      %c0_50 = arith.constant 0 : index
      %142 = memref.load %arg4[%c0_50] : memref<2xf32, #tpu.memory_space<smem>>
      %c0_51 = arith.constant 0 : index
      %143 = memref.load %arg11[%c0_51] : memref<2xf32, #tpu.memory_space<smem>>
      memref.store %142, %arg11[%c0_51] : memref<2xf32, #tpu.memory_space<smem>>
      %c1_52 = arith.constant 1 : index
      %144 = memref.load %arg4[%c1_52] : memref<2xf32, #tpu.memory_space<smem>>
      %c1_53 = arith.constant 1 : index
      %145 = memref.load %arg11[%c1_53] : memref<2xf32, #tpu.memory_space<smem>>
      memref.store %144, %arg11[%c1_53] : memref<2xf32, #tpu.memory_space<smem>>
    } else {
    }
    %c0 = arith.constant 0 : index
    %c0_1 = arith.constant 0 : index
    %c0_2 = arith.constant 0 : index
    %3 = vector.load %arg1[%c0, %c0_1, %c0_2] : memref<1x1x128xf32, #tpu.memory_space<vmem>>, vector<1x1x128xf32>
    %4 = vector.shape_cast %3 : vector<1x1x128xf32> to vector<1x128xf32>
    %cst = arith.constant 0.000000e+00 : f32
    %5 = vector.broadcast %cst : f32 to vector<1x128xf32>
    %6 = arith.cmpf ogt, %4, %5 : vector<1x128xf32>
    %7 = arith.extui %6 : vector<1x128xi1> to vector<1x128xi32>
    %8 = arith.sitofp %7 : vector<1x128xi32> to vector<1x128xf32>
    %cst_3 = arith.constant 1.000000e+00 : f32
    %9 = vector.broadcast %cst_3 : f32 to vector<1x128xf32>
    %10 = arith.select %6, %4, %9 : vector<1x128xi1>, vector<1x128xf32>
    %11 = math.log %10 : vector<1x128xf32>
    %cst_4 = arith.constant 2.000000e+00 : f32
    %12 = math.log %cst_4 : f32
    %13 = vector.broadcast %12 : f32 to vector<1x128xf32>
    %14 = arith.divf %11, %13 : vector<1x128xf32>
    %15 = tpu.iota {dimensions = array<i32: 0>} : vector<128x128xi32>
    %16 = tpu.iota {dimensions = array<i32: 1>} : vector<128x128xi32>
    %17 = arith.cmpi slt, %15, %16 : vector<128x128xi32>
    %18 = arith.extui %17 : vector<128x128xi1> to vector<128x128xi32>
    %19 = arith.sitofp %18 : vector<128x128xi32> to vector<128x128xf32>
    %cst_5 = arith.constant dense<0.000000e+00> : vector<1x128xf32>
    %20 = tpu.matmul %8, %19, %cst_5 {dimension_numbers = #tpu.dot_dimension_numbers<[1], [0], [0], [1], [0, 0, 1, 1], [], []>} : vector<1x128xf32>, vector<128x128xf32>, vector<1x128xf32> -> vector<1x128xf32>
    %21 = vector.shape_cast %8 : vector<1x128xf32> to vector<1x1x128xf32>
    %cst_6 = arith.constant dense<0.000000e+00> : vector<1xf32>
    %22 = vector.multi_reduction <add>, %21, %cst_6 [1, 2] : vector<1x1x128xf32> to vector<1xf32>
    %23 = vector.shape_cast %22 : vector<1xf32> to vector<1x1x1xf32>
    %24 = vector.extract %23[0, 0, 0] : f32 from vector<1x1x1xf32>
    %25 = arith.fptosi %24 : f32 to i32
    %c0_7 = arith.constant 0 : index
    %26 = memref.load %arg10[%c0_7] : memref<2xi32, #tpu.memory_space<smem>>
    %c1 = arith.constant 1 : index
    %27 = memref.load %arg10[%c1] : memref<2xi32, #tpu.memory_space<smem>>
    %28 = arith.fptosi %20 : vector<1x128xf32> to vector<1x128xi32>
    %29 = vector.broadcast %26 : i32 to vector<1x128xi32>
    %30 = arith.addi %29, %28 : vector<1x128xi32>
    %c1000_i32 = arith.constant 1000 : i32
    %31 = vector.broadcast %c1000_i32 : i32 to vector<1x128xi32>
    %32 = arith.cmpi sge, %30, %31 : vector<1x128xi32>
    %c1000_i32_8 = arith.constant 1000 : i32
    %33 = vector.broadcast %c1000_i32_8 : i32 to vector<1x128xi32>
    %34 = arith.subi %30, %33 : vector<1x128xi32>
    %35 = arith.select %32, %34, %30 : vector<1x128xi1>, vector<1x128xi32>
    %c7_i32 = arith.constant 7 : i32
    %36 = vector.broadcast %c7_i32 : i32 to vector<1x128xi32>
    %37 = arith.shrsi %35, %36 : vector<1x128xi32>
    %c127_i32 = arith.constant 127 : i32
    %38 = vector.broadcast %c127_i32 : i32 to vector<1x128xi32>
    %39 = arith.andi %35, %38 : vector<1x128xi32>
    %40 = tpu.iota {dimensions = array<i32: 0>} : vector<16x128xi32>
    %41 = vector.broadcast %37 : vector<1x128xi32> to vector<16x128xi32>
    %42 = arith.cmpi eq, %40, %41 : vector<16x128xi32>
    %43 = arith.mulf %14, %8 : vector<1x128xf32>
    %cst_9 = arith.constant 0.000000e+00 : f32
    %44 = vector.shape_cast %43 : vector<1x128xf32> to vector<1x128xf32>
    %45 = vector.broadcast %44 : vector<1x128xf32> to vector<16x128xf32>
    %46 = vector.broadcast %cst_9 : f32 to vector<16x128xf32>
    %47 = arith.select %42, %45, %46 : vector<16x128xi1>, vector<16x128xf32>
    %c8_i32 = arith.constant 8 : i32
    %48 = vector.broadcast %c8_i32 : i32 to vector<1x128xi32>
    %49 = arith.addi %37, %48 : vector<1x128xi32>
    %50 = vector.broadcast %49 : vector<1x128xi32> to vector<16x128xi32>
    %51 = arith.cmpi eq, %40, %50 : vector<16x128xi32>
    %cst_10 = arith.constant 0.000000e+00 : f32
    %52 = vector.shape_cast %8 : vector<1x128xf32> to vector<1x128xf32>
    %53 = vector.broadcast %52 : vector<1x128xf32> to vector<16x128xf32>
    %54 = vector.broadcast %cst_10 : f32 to vector<16x128xf32>
    %55 = arith.select %51, %53, %54 : vector<16x128xi1>, vector<16x128xf32>
    %56 = arith.addf %47, %55 : vector<16x128xf32>
    %57 = tpu.iota {dimensions = array<i32: 0>} : vector<128x128xi32>
    %58 = vector.broadcast %39 : vector<1x128xi32> to vector<128x128xi32>
    %59 = arith.cmpi eq, %57, %58 : vector<128x128xi32>
    %60 = arith.extui %59 : vector<128x128xi1> to vector<128x128xi32>
    %61 = arith.sitofp %60 : vector<128x128xi32> to vector<128x128xf32>
    %cst_11 = arith.constant dense<0.000000e+00> : vector<16x128xf32>
    %62 = tpu.matmul %56, %61, %cst_11 {dimension_numbers = #tpu.dot_dimension_numbers<[1], [1], [0], [0], [0, 0, 1, 0], [], []>, precision = #tpu.contract_precision<fp32>} : vector<16x128xf32>, vector<128x128xf32>, vector<16x128xf32> -> vector<16x128xf32>
    %63 = vector.extract_strided_slice %62 {offsets = [8, 0], sizes = [8, 128], strides = [1, 1]} : vector<16x128xf32> to vector<8x128xf32>
    %cst_12 = arith.constant 5.000000e-01 : f32
    %64 = vector.broadcast %cst_12 : f32 to vector<8x128xf32>
    %65 = arith.cmpf ogt, %63, %64 : vector<8x128xf32>
    %66 = vector.extract_strided_slice %62 {offsets = [0, 0], sizes = [8, 128], strides = [1, 1]} : vector<16x128xf32> to vector<8x128xf32>
    %c0_13 = arith.constant 0 : index
    %c0_14 = arith.constant 0 : index
    %67 = vector.load %arg9[%c0_13, %c0_14] : memref<8x128xf32, #tpu.memory_space<vmem>>, vector<8x128xf32>
    %68 = arith.select %65, %66, %67 : vector<8x128xi1>, vector<8x128xf32>
    %c0_15 = arith.constant 0 : index
    %c0_16 = arith.constant 0 : index
    %69 = vector.load %arg9[%c0_15, %c0_16] : memref<8x128xf32, #tpu.memory_space<vmem>>, vector<8x128xf32>
    tpu.vector_store %arg9[%c0_15, %c0_16], %68 {strides = array<i32>} : memref<8x128xf32, #tpu.memory_space<vmem>>, vector<8x128xf32>,
    %70 = arith.addi %26, %25 : i32
    %c1000_i32_17 = arith.constant 1000 : i32
    %71 = arith.cmpi sge, %70, %c1000_i32_17 : i32
    %c1000_i32_18 = arith.constant 1000 : i32
    %72 = arith.subi %70, %c1000_i32_18 : i32
    %73 = arith.select %71, %72, %70 : i32
    %74 = arith.addi %27, %25 : i32
    %c1000_i32_19 = arith.constant 1000 : i32
    %75 = arith.minsi %74, %c1000_i32_19 : i32
    %c0_20 = arith.constant 0 : index
    %76 = memref.load %arg10[%c0_20] : memref<2xi32, #tpu.memory_space<smem>>
    memref.store %73, %arg10[%c0_20] : memref<2xi32, #tpu.memory_space<smem>>
    %c1_21 = arith.constant 1 : index
    %77 = memref.load %arg10[%c1_21] : memref<2xi32, #tpu.memory_space<smem>>
    memref.store %75, %arg10[%c1_21] : memref<2xi32, #tpu.memory_space<smem>>
    %78 = tpu.iota {dimensions = array<i32: 0>} : vector<8x128xi32>
    %c128_i32 = arith.constant 128 : i32
    %79 = vector.broadcast %c128_i32 : i32 to vector<8x128xi32>
    %80 = arith.muli %78, %79 : vector<8x128xi32>
    %81 = tpu.iota {dimensions = array<i32: 1>} : vector<8x128xi32>
    %82 = arith.addi %80, %81 : vector<8x128xi32>
    %83 = vector.broadcast %75 : i32 to vector<8x128xi32>
    %84 = arith.cmpi slt, %82, %83 : vector<8x128xi32>
    %85 = arith.extui %84 : vector<8x128xi1> to vector<8x128xi32>
    %86 = arith.sitofp %85 : vector<8x128xi32> to vector<8x128xf32>
    %87 = arith.sitofp %75 : i32 to f32
    %88 = arith.mulf %68, %86 : vector<8x128xf32>
    %89 = vector.shape_cast %88 : vector<8x128xf32> to vector<1x8x128xf32>
    %cst_22 = arith.constant dense<0.000000e+00> : vector<1xf32>
    %90 = vector.multi_reduction <add>, %89, %cst_22 [1, 2] : vector<1x8x128xf32> to vector<1xf32>
    %91 = vector.shape_cast %90 : vector<1xf32> to vector<1x1x1xf32>
    %92 = vector.extract %91[0, 0, 0] : f32 from vector<1x1x1xf32>
    %cst_23 = arith.constant 1.000000e+00 : f32
    %93 = arith.maximumf %87, %cst_23 : f32
    %94 = arith.divf %92, %93 : f32
    %95 = vector.broadcast %94 : f32 to vector<8x128xf32>
    %96 = arith.subf %68, %95 : vector<8x128xf32>
    %97 = arith.mulf %96, %86 : vector<8x128xf32>
    %98 = arith.mulf %97, %97 : vector<8x128xf32>
    %99 = vector.shape_cast %98 : vector<8x128xf32> to vector<1x8x128xf32>
    %cst_24 = arith.constant dense<0.000000e+00> : vector<1xf32>
    %100 = vector.multi_reduction <add>, %99, %cst_24 [1, 2] : vector<1x8x128xf32> to vector<1xf32>
    %101 = vector.shape_cast %100 : vector<1xf32> to vector<1x1x1xf32>
    %102 = vector.extract %101[0, 0, 0] : f32 from vector<1x1x1xf32>
    %cst_25 = arith.constant 1.000000e+00 : f32
    %103 = arith.subf %87, %cst_25 : f32
    %cst_26 = arith.constant 1.000000e+00 : f32
    %104 = arith.maximumf %103, %cst_26 : f32
    %105 = arith.divf %102, %104 : f32
    %106 = math.sqrt %105 : f32
    %c0_i32_27 = arith.constant 0 : i32
    %107 = arith.cmpi sgt, %25, %c0_i32_27 : i32
    %c0_28 = arith.constant 0 : index
    %108 = memref.load %arg11[%c0_28] : memref<2xf32, #tpu.memory_space<smem>>
    %c1_29 = arith.constant 1 : index
    %109 = memref.load %arg11[%c1_29] : memref<2xf32, #tpu.memory_space<smem>>
    %110 = arith.select %107, %94, %108 : f32
    %c1_i32 = arith.constant 1 : i32
    %111 = arith.cmpi sgt, %75, %c1_i32 : i32
    %112 = arith.select %111, %106, %109 : f32
    %cst_30 = arith.constant 1.000000e-07 : f32
    %113 = arith.maximumf %112, %cst_30 : f32
    %114 = arith.select %107, %113, %109 : f32
    %c0_31 = arith.constant 0 : index
    %115 = memref.load %arg11[%c0_31] : memref<2xf32, #tpu.memory_space<smem>>
    memref.store %110, %arg11[%c0_31] : memref<2xf32, #tpu.memory_space<smem>>
    %c1_32 = arith.constant 1 : index
    %116 = memref.load %arg11[%c1_32] : memref<2xf32, #tpu.memory_space<smem>>
    memref.store %114, %arg11[%c1_32] : memref<2xf32, #tpu.memory_space<smem>>
    %117 = vector.broadcast %110 : f32 to vector<1x128xf32>
    %118 = arith.subf %14, %117 : vector<1x128xf32>
    %119 = vector.broadcast %114 : f32 to vector<1x128xf32>
    %120 = arith.divf %118, %119 : vector<1x128xf32>
    %cst_33 = arith.constant 0.196731195 : f32
    %121 = vector.broadcast %cst_33 : f32 to vector<1x128xf32>
    %122 = arith.mulf %120, %121 : vector<1x128xf32>
    %cst_34 = arith.constant 7.78135967 : f32
    %123 = vector.broadcast %cst_34 : f32 to vector<1x128xf32>
    %124 = arith.addf %122, %123 : vector<1x128xf32>
    %cst_35 = arith.constant 0.693147182 : f32
    %125 = vector.broadcast %cst_35 : f32 to vector<1x128xf32>
    %126 = arith.mulf %124, %125 : vector<1x128xf32>
    %127 = math.exp %126 : vector<1x128xf32>
    %cst_36 = arith.constant 0.000000e+00 : f32
    %128 = vector.broadcast %cst_36 : f32 to vector<1x128xf32>
    %129 = arith.select %6, %127, %128 : vector<1x128xi1>, vector<1x128xf32>
    %c0_37 = arith.constant 0 : index
    %c0_38 = arith.constant 0 : index
    %c0_39 = arith.constant 0 : index
    %130 = vector.load %arg5[%c0_37, %c0_38, %c0_39] : memref<1x1x128xf32, #tpu.memory_space<vmem>>, vector<1x1x128xf32>
    %131 = vector.shape_cast %130 : vector<1x1x128xf32> to vector<1x128xf32>
    %132 = vector.shape_cast %129 : vector<1x128xf32> to vector<1x1x128xf32>
    tpu.vector_store %arg5[%c0_37, %c0_38, %c0_39], %132 {strides = array<i32>} : memref<1x1x128xf32, #tpu.memory_space<vmem>>, vector<1x1x128xf32>,
    %c0_i32_40 = arith.constant 0 : i32
    %133 = arith.cmpi eq, %arg0, %c0_i32_40 : i32
    %134 = arith.extui %133 : i1 to i32
    %c0_i32_41 = arith.constant 0 : i32
    %135 = arith.cmpi ne, %134, %c0_i32_41 : i32
    scf.if %135 {
      %c0_42 = arith.constant 0 : index
      %c0_43 = arith.constant 0 : index
      %136 = vector.load %arg9[%c0_42, %c0_43] : memref<8x128xf32, #tpu.memory_space<vmem>>, vector<8x128xf32>
      %c0_44 = arith.constant 0 : index
      %c0_45 = arith.constant 0 : index
      %137 = vector.load %arg6[%c0_44, %c0_45] : memref<8x128xf32, #tpu.memory_space<vmem>>, vector<8x128xf32>
      tpu.vector_store %arg6[%c0_44, %c0_45], %136 {strides = array<i32>} : memref<8x128xf32, #tpu.memory_space<vmem>>, vector<8x128xf32>,
      %c0_46 = arith.constant 0 : index
      %138 = memref.load %arg10[%c0_46] : memref<2xi32, #tpu.memory_space<smem>>
      %c0_47 = arith.constant 0 : index
      %139 = memref.load %arg7[%c0_47] : memref<2xi32, #tpu.memory_space<smem>>
      memref.store %138, %arg7[%c0_47] : memref<2xi32, #tpu.memory_space<smem>>
      %c1_48 = arith.constant 1 : index
      %140 = memref.load %arg10[%c1_48] : memref<2xi32, #tpu.memory_space<smem>>
      %c1_49 = arith.constant 1 : index
      %141 = memref.load %arg7[%c1_49] : memref<2xi32, #tpu.memory_space<smem>>
      memref.store %140, %arg7[%c1_49] : memref<2xi32, #tpu.memory_space<smem>>
      %c0_50 = arith.constant 0 : index
      %142 = memref.load %arg11[%c0_50] : memref<2xf32, #tpu.memory_space<smem>>
      %c0_51 = arith.constant 0 : index
      %143 = memref.load %arg8[%c0_51] : memref<2xf32, #tpu.memory_space<smem>>
      memref.store %142, %arg8[%c0_51] : memref<2xf32, #tpu.memory_space<smem>>
      %c1_52 = arith.constant 1 : index
      %144 = memref.load %arg11[%c1_52] : memref<2xf32, #tpu.memory_space<smem>>
      %c1_53 = arith.constant 1 : index
      %145 = memref.load %arg8[%c1_53] : memref<2xf32, #tpu.memory_space<smem>>
      memref.store %144, %arg8[%c1_53] : memref<2xf32, #tpu.memory_space<smem>>
    } else {
    }
    return
  }
  func.func @transform_0(%arg0: i32) -> (i32, i32, i32) {
    %c0_i32 = arith.constant 0 : i32
    %c0_i32_0 = arith.constant 0 : i32
    %c0_i32_1 = arith.constant 0 : i32
    return %arg0, %c0_i32, %c0_i32_0 : i32, i32, i32
  }
  func.func @transform_1(%arg0: i32) -> (i32, i32) {
    %c0_i32 = arith.constant 0 : i32
    %c0_i32_0 = arith.constant 0 : i32
    %c0_i32_1 = arith.constant 0 : i32
    return %c0_i32, %c0_i32_0 : i32, i32
  }
  func.func @transform_2(%arg0: i32) -> i32 {
    %c0_i32 = arith.constant 0 : i32
    %c0_i32_0 = arith.constant 0 : i32
    return %c0_i32 : i32
  }
  func.func @transform_3(%arg0: i32) -> i32 {
    %c0_i32 = arith.constant 0 : i32
    %c0_i32_0 = arith.constant 0 : i32
    return %c0_i32 : i32
  }
  func.func @transform_4(%arg0: i32) -> (i32, i32, i32) {
    %c0_i32 = arith.constant 0 : i32
    %c0_i32_0 = arith.constant 0 : i32
    %c0_i32_1 = arith.constant 0 : i32
    return %arg0, %c0_i32, %c0_i32_0 : i32, i32, i32
  }
  func.func @transform_5(%arg0: i32) -> (i32, i32) {
    %c0_i32 = arith.constant 0 : i32
    %c0_i32_0 = arith.constant 0 : i32
    %c0_i32_1 = arith.constant 0 : i32
    return %c0_i32, %c0_i32_0 : i32, i32
  }
  func.func @transform_6(%arg0: i32) -> i32 {
    %c0_i32 = arith.constant 0 : i32
    %c0_i32_0 = arith.constant 0 : i32
    return %c0_i32 : i32
  }
  func.func @transform_7(%arg0: i32) -> i32 {
    %c0_i32 = arith.constant 0 : i32
    %c0_i32_0 = arith.constant 0 : i32
    return %c0_i32 : i32
  }
}

</mosaic_0001>

<bundles_post_ra>
// kernel: tpu_custom_call.1
= control target key start
LH: loop header
LB: loop body
LE: loop exit
PB: predicated region body
PF: predicated region fallthrough
CT: control target
= control target key end

     0   :  { %13 = vsyncpa [#allocation6], 0  ;;  %s2813_s0 = inlined_call_operand.vmem [shape: f32[1,1,128], index: 0, kind: input, shape index: {}]   ;;  %s2814_s1 = inlined_call_operand.hbm [shape: f32[8,128], index: 1, kind: input, shape index: {}, may-alias: {1,5}]   ;;  %s2815_s2 = inlined_call_operand.hbm [shape: s32[2], index: 2, kind: input, shape index: {}, may-alias: {2,6}]   ;;  %s2816_s3 = inlined_call_operand.hbm [shape: f32[2], index: 3, kind: input, shape index: {}, may-alias: {3,7}]   ;;  %s2817_s4 = inlined_call_operand.hbm [shape: f32[1,1,128], index: 4, kind: output, shape index: {0}]   ;;  %s2818_s5 = inlined_call_operand.hbm [shape: f32[8,128], index: 5, kind: output, shape index: {1}, may-alias: {1,5}]   ;;  %s2819_s6 = inlined_call_operand.hbm [shape: s32[2], index: 6, kind: output, shape index: {2}, may-alias: {2,6}]   ;;  %s2820_s7 = inlined_call_operand.hbm [shape: f32[2], index: 7, kind: output, shape index: {3}, may-alias: {3,7}]  }
   0x1   :  { %14 = vsyncpa [#allocation8], 0 }
   0x2   :  { %15 = vsyncpa [#allocation12], 0 }
   0x3   :  { %16 = vsyncpa [#allocation7], 0 }
   0x4   :  { %17 = vsyncpa [#allocation15], 0 }
   0x5   :  { %18 = vsyncpa [#allocation9], 0 }
   0x6   :  { %19 = vsyncpa [#allocation18], 0  ;;  %s2050_s24 = smov [#allocation5]   ;;  %s1930_s28 = scalar_lea.hbm %s2814_s1, 128 }
   0x7   :  { %s28_s25 = sshll.u32 %s2050_s24, 4  ;;  %p1931_p0 = scmp.ne.s32.totalorder %s2814_s1, %s1930_s28  ;;  %s29_s25 = int_to_ptr.vmem [resolvable:$true] %s28_s25 }
   0x8   :  { %p1934_p1 = scmp.lt.u32.totalorder %s1930_s28, %s2814_s1 }
   0xa   :  { %p1936_p2 = pnand %p1934_p1, %p1931_p0 }
   0xc   :  { %1939 = shalt.err (!%p1936_p2)
}
   0xd   :  { %s1940_s10 = scalar_lea.vmem %s29_s25, 128  ;;  %p1945_p4 = scmp.lt.s32.totalorder %s29_s25, %s29_s25 }
   0xe   :  { %p1941_p3 = scmp.ne.s32.totalorder %s29_s25, %s1940_s10  ;;  %p1946_p5 = scmp.lt.s32.totalorder %s1940_s10, %s1940_s10 }
  0x10   :  { %p1947_p6 = por %p1946_p5, %p1945_p4 }
  0x12   :  { %p1948_p7 = pnand %p1947_p6, %p1941_p3 }
  0x14   :  { %1951 = shalt.err (!%p1948_p7)
}
  0x15   :  { %31 = dma.hbm_to_vmem [thread:$0]  %s2814_s1, 128, %s29_s25, [#allocation6]  }
  0x16   :  { %s1952_s15 = scalar_lea.hbm %s2815_s2, 16 }
  0x17   :  { %p1953_p8 = scmp.ne.s32.totalorder %s2815_s2, %s1952_s15  ;;  %p1956_p9 = scmp.lt.u32.totalorder %s1952_s15, %s2815_s2 }
  0x19   :  { %p1958_p10 = pnand %p1956_p9, %p1953_p8 }
  0x1b   :  { %1961 = shalt.err (!%p1958_p10)
}
  0x1c   :  { %s2051_s20 = smov [#allocation10]   ;;  %s1962_s24 = scalar_lea.hbm %s2816_s3, 16 }
  0x1d   :  { %39 = dma.hbm_to_smem %s2815_s2, 16, %s2051_s20, [#allocation8]  }
  0x1e   :  { %p1963_p11 = scmp.ne.s32.totalorder %s2816_s3, %s1962_s24  ;;  %p1966_p12 = scmp.lt.u32.totalorder %s1962_s24, %s2816_s3 }
  0x20   :  { %p1968_p13 = pnand %p1966_p12, %p1963_p11 }
  0x22   :  { %1971 = shalt.err (!%p1968_p13)
}
  0x23   :  { %s2052_s29 = smov [#allocation11]  }
  0x24   :  { %47 = dma.hbm_to_smem %s2816_s3, 16, %s2052_s29, [#allocation12]  }
  0x25   :  { %2036 = dma.done.wait [#allocation6], 128  }
  0x26   :  { %2037 = vsyncadd [#allocation6], 4294967168 }
  0x27   :  { %2038 = dma.done.wait [#allocation8], 16  }
  0x28   :  { %2039 = vsyncadd [#allocation8], 4294967280 }
  0x29   :  { %2040 = dma.done.wait [#allocation12], 16  }
  0x2a   :  { %2041 = vsyncadd [#allocation12], 4294967280 }
  0x2b   :  { %57 = sfence }
  0x2c   :  { %v85_v0 = vlaneseq  ;;  %v2053_v1 = vmov 0.0|0.0   ;;  %vm2054_vm0 = vmmov 0   ;;  %v2055_v4 = vmov 0.0   ;;  %v2232_v21 = vld [vmem:[%s2813_s0] sm:$0x1]  ;;  %s2241_s9 = sld [smem:[#allocation10]] }
  0x2d   :  { %1659 = vmatprep.subr.bf16.mxu0 %v2053_v1  ;;  %1446 = vmatprep.mubr.msk.f32.mxu0 %vm2054_vm0, %v2055_v4  ;;  %v2056_v10 = vmov 1.0|1.0   ;;  %v2057_v22 = vmov 1.0   ;;  %s1174_s12 = sld [smem:[#allocation10 + $0x1]]  ;;  %s2058_s20 = smov 1.0  }
  0x2e   :  { %v2140_v2 = vshrl.u32 %v85_v0, 7  ;;  %v2142_v3 = vand.u32 127, %v85_v0  ;;  %s70_s1 = sld [smem:[#allocation11]]  ;;  %s2059_s26 = smov [#allocation14]  }
  0x2f   :  { %s1134_s27 = sshll.u32 %s2059_s26, 4  ;;  %s1135_s27 = int_to_ptr.vmem [resolvable:$true] %s1134_s27 }
  0x30   :  { %v2146_v5 = vadd.s32 8, %v2140_v2  ;;  %vm104_vm1 = vcmp.lt.s32.totalorder %v2140_v2, %v2142_v3  ;;  %v2151_v6 = vadd.s32 16, %v2140_v2  ;;  %v2154_v7 = vadd.s32 24, %v2140_v2  ;;  %s1972_s28 = scalar_lea.vmem %s1135_s27, 128  ;;  %p1977_p5 = scmp.lt.s32.totalorder %s1135_s27, %s1135_s27 }
  0x31   :  { %v2157_v8 = vadd.s32 32, %v2140_v2  ;;  %v2166_v9 = vadd.s32 40, %v2140_v2  ;;  %v2174_v11 = vadd.s32 48, %v2140_v2  ;;  %v2177_v12 = vadd.s32 56, %v2140_v2  ;;  %p1973_p4 = scmp.ne.s32.totalorder %s1135_s27, %s1972_s28  ;;  %p1978_p6 = scmp.lt.s32.totalorder %s1972_s28, %s1972_s28 }
  0x32   :  { %vm105_vm2 = vcmp.lt.s32.totalorder %v2146_v5, %v2142_v3  ;;  %vm106_vm3 = vcmp.lt.s32.totalorder %v2151_v6, %v2142_v3  ;;  %vm107_vm4 = vcmp.lt.s32.totalorder %v2154_v7, %v2142_v3  ;;  %v2185_v13 = vadd.s32 64, %v2140_v2 }
  0x33   :  { %vm1660_vm5 = vmpackc.low %vm105_vm2, %vm104_vm1  ;;  %vm108_vm7 = vcmp.lt.s32.totalorder %v2157_v8, %v2142_v3  ;;  %vm109_vm8 = vcmp.lt.s32.totalorder %v2166_v9, %v2142_v3  ;;  %vm110_vm10 = vcmp.lt.s32.totalorder %v2174_v11, %v2142_v3  ;;  %vm111_vm11 = vcmp.lt.s32.totalorder %v2177_v12, %v2142_v3  ;;  %p1979_p7 = por %p1978_p6, %p1977_p5 }
  0x34   :  { %1661 = vmatpush3.bf16.msk.msra.mxu0 %vm1660_vm5, %v2056_v10  ;;  %vm1663_vm6 = vmpackc.low %vm107_vm4, %vm106_vm3  ;;  %v2188_v14 = vadd.s32 72, %v2140_v2  ;;  %vm112_vm13 = vcmp.lt.s32.totalorder %v2185_v13, %v2142_v3  ;;  %v2196_v15 = vadd.s32 80, %v2140_v2  ;;  %v2199_v16 = vadd.s32 88, %v2140_v2 }
  0x35   :  { %1662 = vmatprep.subr.bf16.mxu0 %v2053_v1  ;;  %vm1666_vm9 = vmpackc.low %vm109_vm8, %vm108_vm7  ;;  %v2207_v17 = vadd.s32 96, %v2140_v2  ;;  %v2210_v18 = vadd.s32 104, %v2140_v2  ;;  %v2218_v19 = vadd.s32 112, %v2140_v2  ;;  %v2221_v20 = vadd.s32 120, %v2140_v2  ;;  %p1980_p8 = pnand %p1979_p7, %p1973_p4 }
  0x36   :  { %vm1669_vm12 = vmpackc.low %vm111_vm11, %vm110_vm10  ;;  %vm113_vm14 = vcmp.lt.s32.totalorder %v2188_v14, %v2142_v3  ;;  %vm114_vm0 = vcmp.lt.s32.totalorder %v2196_v15, %v2142_v3  ;;  %vm115_vm1 = vcmp.lt.s32.totalorder %v2199_v16, %v2142_v3  ;;  %v237_v28 = vstv %s2241_s9 }
  0x37   :  { %vm1672_vm15 = vmpackc.low %vm113_vm14, %vm112_vm13  ;;  %vm116_vm3 = vcmp.lt.s32.totalorder %v2207_v17, %v2142_v3  ;;  %vm117_vm4 = vcmp.lt.s32.totalorder %v2210_v18, %v2142_v3  ;;  %vm119_vm7 = vcmp.lt.s32.totalorder %v2221_v20, %v2142_v3  ;;  %v246_v33 = vsub.s32 0, %v2140_v2 }
  0x38   :  { %1664 = vmatpush3.bf16.msk.msra.mxu0 %vm1663_vm6, %v2056_v10  ;;  %vm1675_vm2 = vmpackc.low %vm115_vm1, %vm114_vm0  ;;  %vm118_vm6 = vcmp.lt.s32.totalorder %v2218_v19, %v2142_v3 }
  0x39   :  { %1665 = vmatprep.subr.bf16.mxu0 %v2053_v1  ;;  %vm1678_vm5 = vmpackc.low %vm117_vm4, %vm116_vm3 }
  0x3a   :  { %vm1681_vm8 = vmpackc.low %vm119_vm7, %vm118_vm6 }
  0x3c   :  { %1667 = vmatpush3.bf16.msk.msra.mxu0 %vm1666_vm9, %v2056_v10  ;;  %vm77_vm9 = vcmp.gt.f32.partialorder %v2232_v21, 0.0 }
  0x3d   :  { %1668 = vmatprep.subr.bf16.mxu0 %v2053_v1  ;;  %v80_v23 = vsel %vm77_vm9, %v2232_v21, 1.0  ;;  %v2250_v36 = vsel %vm77_vm9, 1.0, %v2055_v4 }
  0x3e   :  { %1918 = vlog2.f32 %v80_v23  ;;  %v2283_v44 = vrot.slane %v2250_v36, %v246_v33 }
  0x40   :  { %1670 = vmatpush3.bf16.msk.msra.mxu0 %vm1669_vm12, %v2056_v10 }
  0x41   :  { %1671 = vmatprep.subr.bf16.mxu0 %v2053_v1 }
  0x44   :  { %1673 = vmatpush3.bf16.msk.msra.mxu0 %vm1672_vm15, %v2056_v10 }
  0x45   :  { %1674 = vmatprep.subr.bf16.mxu0 %v2053_v1 }
  0x48   :  { %1676 = vmatpush3.bf16.msk.msra.mxu0 %vm1675_vm2, %v2056_v10  ;;  %v1919_v27 = vpop.eup %1918 }
  0x49   :  { %1677 = vmatprep.subr.bf16.mxu0 %v2053_v1  ;;  %v82_v30 = vmul.f32 0.6931472, %v1919_v27 }
  0x4b   :  { %v2245_v34 = vmul.f32 1.442695, %v82_v30 }
  0x4c   :  { %1679 = vmatpush3.bf16.msk.msra.mxu0 %vm1678_vm5, %v2056_v10 }
  0x4d   :  { %1680 = vmatprep.subr.bf16.mxu0 %v2053_v1  ;;  %v250_v40 = vmul.f32 %v2250_v36, %v2245_v34 }
  0x4f   :  { %v2301_v46 = vrot.slane %v250_v40, %v246_v33 }
  0x50   :  { %1682 = vmatpush3.bf16.msk.msra.mxu0 %vm1681_vm8, %v2056_v10 }
  0x53   :  { %1447 = vmatmul.mubr.msk.f32.vlgmr.msra.gmra.mrb[0].mxu0 %vm77_vm9, %v2057_v22 }
 0x126   :  { %v218_v24 = vpop.f32.mrb[0].mxu0 }
 0x127   :  { %v1892_v25 = vtrunc.f32 %v218_v24  ;;  %v1448_v26 = vpop.f32.mrb[1].mxu0 }
 0x129   :  { %v1893_v29 = vcvt.f32.s32 %v1892_v25 }
 0x12b   :  { %v238_v31 = vadd.s32 %v1893_v29, %v237_v28 }
 0x12d   :  { %vm239_vm10 = vcmp.ge.s32.totalorder %v238_v31, 1000  ;;  %v1211_v32 = vadd.s32 4294966296, %v238_v31 }
 0x12f   :  { %v241_v35 = vsel %vm239_vm10, %v1211_v32, %v238_v31 }
 0x130   :  { %v242_v37 = vshra.s32 %v241_v35, 7  ;;  %v243_v38 = vand.u32 127, %v241_v35 }
 0x132   :  { %v2252_v39 = vrot.slane %v243_v38, %v246_v33  ;;  %v2256_v41 = vrot.slane %v242_v37, %v246_v33  ;;  %v259_v42 = vadd.s32 8, %v242_v37 }
 0x134   :  { %vm280_vm11 = vcmp.eq.s32.totalorder %v2140_v2, %v2252_v39  ;;  %vm281_vm12 = vcmp.eq.s32.totalorder %v2146_v5, %v2252_v39  ;;  %vm282_vm13 = vcmp.eq.s32.totalorder %v2151_v6, %v2252_v39  ;;  %vm283_vm15 = vcmp.eq.s32.totalorder %v2154_v7, %v2252_v39 }
 0x135   :  { %vm2270_vm14 = vmpackc.low %vm281_vm12, %vm280_vm11  ;;  %vm248_vm1 = vcmp.eq.s32.totalorder %v2140_v2, %v2256_v41  ;;  %v2311_v47 = vrot.slane %v259_v42, %v246_v33  ;;  %vm284_vm3 = vcmp.eq.s32.totalorder %v2157_v8, %v2252_v39  ;;  %vm285_vm4 = vcmp.eq.s32.totalorder %v2166_v9, %v2252_v39 }
 0x136   :  { %1684 = vmatprep.subr.msk.bf16.mxu0 %vm2270_vm14, %v2056_v10  ;;  %1780 = vmatprep.subr.msk.bf16.mxu1 %vm2270_vm14, %v2056_v10  ;;  %vm2297_vm0 = vmpackc.low %vm283_vm15, %vm282_vm13  ;;  %v257_v48 = vsel %vm248_vm1, %v2301_v46, 0.0  ;;  %vm286_vm6 = vcmp.eq.s32.totalorder %v2174_v11, %v2252_v39  ;;  %vm287_vm7 = vcmp.eq.s32.totalorder %v2177_v12, %v2252_v39  ;;  %v1212_v56 = vsel %vm280_vm11, 1.0, %v2055_v4 }
 0x137   :  { %1686 = vmatpush3.bf16.xpose.msk.msra.mxu0 %vm2270_vm14, %v2056_v10  ;;  %1782 = vmatpush3.bf16.xpose.msk.msra.mxu1 %vm2270_vm14, %v2056_v10  ;;  %vm264_vm2 = vcmp.eq.s32.totalorder %v2140_v2, %v2311_v47  ;;  %vm2335_vm5 = vmpackc.low %vm285_vm4, %vm284_vm3  ;;  %v1213_v58 = vsel %vm281_vm12, 1.0, %v2055_v4  ;;  %v1214_v59 = vsel %vm282_vm13, 1.0, %v2055_v4  ;;  %v1215_v60 = vsel %vm283_vm15, 1.0, %v2055_v4 }
 0x138   :  { %1688 = vmatprep.subr.msk.bf16.mxu0 %vm2297_vm0, %v2056_v10  ;;  %1784 = vmatprep.subr.msk.bf16.mxu1 %vm2297_vm0, %v2056_v10  ;;  %v272_v49 = vsel %vm264_vm2, %v2283_v44, 0.0  ;;  %vm2382_vm8 = vmpackc.low %vm287_vm7, %vm286_vm6  ;;  %v2389_v62 = vsub.f32 %v1212_v56, %v1212_v56  ;;  %v2394_v63 = vsub.f32 %v1213_v58, %v1213_v58  ;;  %v2396_v0 = vsub.f32 %v1214_v59, %v1214_v59 }
 0x139   :  { %v274_v50 = vadd.f32 %v272_v49, %v257_v48  ;;  %v2398_v1 = vsub.f32 %v1215_v60, %v1215_v60  ;;  %v1216_v6 = vsel %vm284_vm3, 1.0, %v2055_v4  ;;  %vm288_vm10 = vcmp.eq.s32.totalorder %v2185_v13, %v2252_v39 }
 0x13a   :  { %vm289_vm11 = vcmp.eq.s32.totalorder %v2188_v14, %v2252_v39  ;;  %vm290_vm12 = vcmp.eq.s32.totalorder %v2196_v15, %v2252_v39  ;;  %vm291_vm13 = vcmp.eq.s32.totalorder %v2199_v16, %v2252_v39  ;;  %vm292_vm15 = vcmp.eq.s32.totalorder %v2207_v17, %v2252_v39 }
 0x13b   :  { %v2321_v51 = vand.u32 4294901760, %v274_v50  ;;  %vm293_vm1 = vcmp.eq.s32.totalorder %v2210_v18, %v2252_v39  ;;  %vm294_vm2 = vcmp.eq.s32.totalorder %v2218_v19, %v2252_v39  ;;  %vm295_vm3 = vcmp.eq.s32.totalorder %v2221_v20, %v2252_v39 }
 0x13c   :  { %v1217_v7 = vsel %vm285_vm4, 1.0, %v2055_v4  ;;  %v2424_v8 = vsub.f32 %v1216_v6, %v1216_v6  ;;  %v1218_v22 = vsel %vm286_vm6, 1.0, %v2055_v4  ;;  %v1219_v23 = vsel %vm287_vm7, 1.0, %v2055_v4  ;;  %vm2462_vm4 = vmpackc.low %vm289_vm11, %vm288_vm10 }
 0x13d   :  { %v2346_v53 = vsub.f32 %v274_v50, %v2321_v51  ;;  %v1220_v24 = vsel %vm288_vm10, 1.0, %v2055_v4  ;;  %v1221_v9 = vsel %vm289_vm11, 1.0, %v2055_v4  ;;  %v1222_v11 = vsel %vm290_vm12, 1.0, %v2055_v4  ;;  %vm2554_vm6 = vmpackc.low %vm291_vm13, %vm290_vm12 }
 0x13e   :  { %v1223_v12 = vsel %vm291_vm13, 1.0, %v2055_v4  ;;  %v1224_v26 = vsel %vm292_vm15, 1.0, %v2055_v4  ;;  %v1225_v27 = vsel %vm293_vm1, 1.0, %v2055_v4  ;;  %v1226_v13 = vsel %vm294_vm2, 1.0, %v2055_v4  ;;  %vm2582_vm11 = vmpackc.low %vm293_vm1, %vm292_vm15 }
 0x13f   :  { %1690 = vmatpush3.bf16.xpose.msk.msra.mxu0 %vm2297_vm0, %v2056_v10  ;;  %1786 = vmatpush3.bf16.xpose.msk.msra.mxu1 %vm2297_vm0, %v2056_v10  ;;  %v411_v54 = vand.u32 4294901760, %v2346_v53  ;;  %v1227_v14 = vsel %vm295_vm3, 1.0, %v2055_v4  ;;  %v2482_v28 = vsub.f32 %v1217_v7, %v1217_v7  ;;  %v2484_v29 = vsub.f32 %v1218_v22, %v1218_v22  ;;  %vm2610_vm12 = vmpackc.low %vm295_vm3, %vm294_vm2 }
 0x140   :  { %1692 = vmatprep.subr.msk.bf16.mxu0 %vm2335_vm5, %v2056_v10  ;;  %1788 = vmatprep.subr.msk.bf16.mxu1 %vm2335_vm5, %v2056_v10  ;;  %v2486_v30 = vsub.f32 %v1219_v23, %v1219_v23  ;;  %v2494_v31 = vsub.f32 %v1220_v24, %v1220_v24  ;;  %v2496_v32 = vsub.f32 %v1221_v9, %v1221_v9  ;;  %v439_v17 = vand.u32 4294901760, %v2394_v63 }
 0x141   :  { %v412_v55 = vsub.f32 %v2346_v53, %v411_v54  ;;  %1586 = vmatprep.mubr.f32.mxu1 %v411_v54  ;;  %v2498_v33 = vsub.f32 %v1222_v11, %v1222_v11  ;;  %v2500_v35 = vsub.f32 %v1223_v12, %v1223_v12  ;;  %v2502_v37 = vsub.f32 %v1224_v26, %v1224_v26 }
 0x142   :  { %v2504_v38 = vsub.f32 %v1225_v27, %v1225_v27  ;;  %v2506_v40 = vsub.f32 %v1226_v13, %v1226_v13  ;;  %v2508_v42 = vsub.f32 %v1227_v14, %v1227_v14  ;;  %v2512_v48 = vpack.c.bf16 %v2394_v63, %v2389_v62 }
 0x143   :  { %v413_v57 = vand.u32 4294901760, %v412_v55  ;;  %v2516_v49 = vpack.c.bf16 %v2398_v1, %v2396_v0  ;;  %v2520_v50 = vpack.c.bf16 %v2482_v28, %v2424_v8  ;;  %v2524_v54 = vpack.c.bf16 %v2486_v30, %v2484_v29 }
 0x144   :  { %v2528_v55 = vpack.c.bf16 %v2496_v32, %v2494_v31  ;;  %v2532_v56 = vpack.c.bf16 %v2500_v35, %v2498_v33  ;;  %v2540_v58 = vpack.c.bf16 %v2508_v42, %v2506_v40  ;;  %vm265_vm7 = vcmp.eq.s32.totalorder %v2146_v5, %v2311_v47 }
 0x145   :  { %1481 = vmatprep.mubr.f32.mxu0 %v413_v57  ;;  %v2536_v57 = vpack.c.bf16 %v2504_v38, %v2502_v37  ;;  %vm249_vm10 = vcmp.eq.s32.totalorder %v2146_v5, %v2256_v41  ;;  %v273_v15 = vsel %vm265_vm7, %v2283_v44, 0.0  ;;  %v432_v44 = vand.u32 4294901760, %v2389_v62 }
 0x146   :  { %v258_v16 = vsel %vm249_vm10, %v2301_v46, 0.0  ;;  %v440_v47 = vsub.f32 %v2394_v63, %v439_v17  ;;  %vm222_vm13 = vcmask 1040384   ;;  %v446_v39 = vand.u32 4294901760, %v2396_v0 }
 0x147   :  { %1694 = vmatpush3.bf16.xpose.msk.msra.mxu0 %vm2335_vm5, %v2056_v10  ;;  %1790 = vmatpush3.bf16.xpose.msk.msra.mxu1 %vm2335_vm5, %v2056_v10  ;;  %v275_v41 = vadd.f32 %v273_v15, %v258_v16  ;;  %v433_v18 = vsub.f32 %v2389_v62, %v432_v44  ;;  %v223_v20 = vsel %vm222_vm13, %v2250_v36, 0.0  ;;  %v453_v6 = vand.u32 4294901760, %v2398_v1 }
 0x148   :  { %1696 = vmatprep.subr.msk.bf16.mxu0 %vm2382_vm8, %v2056_v10  ;;  %1792 = vmatprep.subr.msk.bf16.mxu1 %vm2382_vm8, %v2056_v10  ;;  %v441_v63 = vand.u32 4294901760, %v440_v47  ;;  %v1811_v23 = vpack.c.bf16 %v439_v17, %v432_v44  ;;  %v447_v24 = vsub.f32 %v2396_v0, %v446_v39  ;;  %v460_v11 = vand.u32 4294901760, %v2424_v8 }
 0x149   :  { %v2594_v46 = vand.u32 4294901760, %v275_v41  ;;  %v434_v19 = vand.u32 4294901760, %v433_v18  ;;  %224 = vadd.xlane.f32.xlu0 %v223_v20  ;;  %v454_v36 = vsub.f32 %v2398_v1, %v453_v6  ;;  %v467_v12 = vand.u32 4294901760, %v2482_v28 }
 0x14a   :  { %v448_v26 = vand.u32 4294901760, %v447_v24  ;;  %v461_v14 = vsub.f32 %v2424_v8, %v460_v11  ;;  %v1815_v1 = vpack.c.bf16 %v453_v6, %v446_v39  ;;  %v474_v44 = vand.u32 4294901760, %v2484_v29 }
 0x14b   :  { %v2621_v62 = vsub.f32 %v275_v41, %v2594_v46  ;;  %v1715_v22 = vpack.c.bf16 %v441_v63, %v434_v19  ;;  %v455_v27 = vand.u32 4294901760, %v454_v36  ;;  %v468_v15 = vsub.f32 %v2482_v28, %v467_v12 }
 0x14c   :  { %v462_v16 = vand.u32 4294901760, %v461_v14  ;;  %v481_v17 = vand.u32 4294901760, %v2486_v30  ;;  %v475_v8 = vsub.f32 %v2484_v29, %v474_v44  ;;  %v1819_v47 = vpack.c.bf16 %v467_v12, %v460_v11 }
 0x14d   :  { %v421_v7 = vand.u32 4294901760, %v2621_v62  ;;  %v1719_v0 = vpack.c.bf16 %v455_v27, %v448_v26  ;;  %v469_v41 = vand.u32 4294901760, %v468_v15  ;;  %v488_v20 = vand.u32 4294901760, %v2494_v31 }
 0x14e   :  { %v482_v28 = vsub.f32 %v2486_v30, %v481_v17  ;;  %v476_v19 = vand.u32 4294901760, %v475_v8  ;;  %v495_v39 = vand.u32 4294901760, %v2496_v32  ;;  %v1823_v29 = vpack.c.bf16 %v481_v17, %v474_v44 }
 0x14f   :  { %1698 = vmatpush3.bf16.xpose.msk.msra.mxu0 %vm2382_vm8, %v2056_v10  ;;  %1794 = vmatpush3.bf16.xpose.msk.msra.mxu1 %vm2382_vm8, %v2056_v10  ;;  %v422_v9 = vsub.f32 %v2621_v62, %v421_v7  ;;  %v1723_v18 = vpack.c.bf16 %v469_v41, %v462_v16  ;;  %v502_v24 = vand.u32 4294901760, %v2498_v33  ;;  %v509_v36 = vand.u32 4294901760, %v2500_v35 }
 0x150   :  { %1700 = vmatprep.subr.msk.bf16.mxu0 %vm2462_vm4, %v2056_v10  ;;  %1796 = vmatprep.subr.msk.bf16.mxu1 %vm2462_vm4, %v2056_v10  ;;  %v483_v63 = vand.u32 4294901760, %v482_v28  ;;  %v516_v27 = vand.u32 4294901760, %v2502_v37  ;;  %v530_v16 = vand.u32 4294901760, %v2506_v40  ;;  %v537_v41 = vand.u32 4294901760, %v2508_v42 }
 0x151   :  { %v423_v13 = vand.u32 4294901760, %v422_v9  ;;  %v503_v11 = vsub.f32 %v2498_v33, %v502_v24  ;;  %v510_v12 = vsub.f32 %v2500_v35, %v509_v36  ;;  %v1831_v33 = vpack.c.bf16 %v509_v36, %v502_v24 }
 0x152   :  { %v1727_v6 = vpack.c.bf16 %v483_v63, %v476_v19  ;;  %v517_v15 = vsub.f32 %v2502_v37, %v516_v27  ;;  %v531_v17 = vsub.f32 %v2506_v40, %v530_v16 }
 0x153   :  { %v511_v26 = vand.u32 4294901760, %v510_v12 }
 0x154   :  { %v518_v35 = vand.u32 4294901760, %v517_v15 }
 0x157   :  { %1702 = vmatpush3.bf16.xpose.msk.msra.mxu0 %vm2462_vm4, %v2056_v10  ;;  %1798 = vmatpush3.bf16.xpose.msk.msra.mxu1 %vm2462_vm4, %v2056_v10 }
 0x158   :  { %1704 = vmatprep.subr.msk.bf16.mxu0 %vm2554_vm6, %v2056_v10  ;;  %1800 = vmatprep.subr.msk.bf16.mxu1 %vm2554_vm6, %v2056_v10 }
 0x15f   :  { %1706 = vmatpush3.bf16.xpose.msk.msra.mxu0 %vm2554_vm6, %v2056_v10  ;;  %1802 = vmatpush3.bf16.xpose.msk.msra.mxu1 %vm2554_vm6, %v2056_v10 }
 0x160   :  { %1708 = vmatprep.subr.msk.bf16.mxu0 %vm2582_vm11, %v2056_v10  ;;  %1804 = vmatprep.subr.msk.bf16.mxu1 %vm2582_vm11, %v2056_v10 }
 0x167   :  { %1710 = vmatpush3.bf16.xpose.msk.msra.mxu0 %vm2582_vm11, %v2056_v10  ;;  %1806 = vmatpush3.bf16.xpose.msk.msra.mxu1 %vm2582_vm11, %v2056_v10 }
 0x168   :  { %1712 = vmatprep.subr.msk.bf16.mxu0 %vm2610_vm12, %v2056_v10  ;;  %1808 = vmatprep.subr.msk.bf16.mxu1 %vm2610_vm12, %v2056_v10 }
 0x16f   :  { %1714 = vmatpush3.bf16.xpose.msk.msra.mxu0 %vm2610_vm12, %v2056_v10  ;;  %1810 = vmatpush3.bf16.xpose.msk.msra.mxu1 %vm2610_vm12, %v2056_v10 }
 0x170   :  { %1716 = vmatprep.subr.bf16.mxu0 %v1715_v22  ;;  %1812 = vmatprep.subr.bf16.mxu1 %v1811_v23 }
 0x176   :  { %1482 = vmatmul.mubr.f32.vlgmr.msra.gmra.mrb[2].mxu0 %v423_v13  ;;  %1587 = vmatmul.mubr.f32.vlgmr.msra.gmra.mrb[0].mxu1 %v421_v7  ;;  %v489_v7 = vsub.f32 %v2494_v31, %v488_v20  ;;  %v1827_v31 = vpack.c.bf16 %v495_v39, %v488_v20  ;;  %v523_v13 = vand.u32 4294901760, %v2504_v38 }
 0x177   :  { %1718 = vmatpush3.bf16.xpose.msra.mxu0 %v1715_v22  ;;  %1516 = vmatprep.mubr.f32.mxu0 %v2321_v51  ;;  %v496_v22 = vsub.f32 %v2496_v32, %v495_v39  ;;  %v504_v32 = vand.u32 4294901760, %v503_v11 }
 0x178   :  { %1814 = vmatpush3.bf16.xpose.msra.mxu1 %v1811_v23  ;;  %1621 = vmatprep.mubr.f32.mxu1 %v2321_v51  ;;  %v490_v30 = vand.u32 4294901760, %v489_v7  ;;  %v1835_v37 = vpack.c.bf16 %v523_v13, %v516_v27 }
 0x179   :  { %1720 = vmatprep.subr.bf16.mxu0 %v1719_v0  ;;  %1816 = vmatprep.subr.bf16.mxu1 %v1815_v1  ;;  %v497_v23 = vand.u32 4294901760, %v496_v22  ;;  %v1735_v14 = vpack.c.bf16 %v511_v26, %v504_v32 }
 0x17b   :  { %v1731_v9 = vpack.c.bf16 %v497_v23, %v490_v30 }
 0x17f   :  { %1722 = vmatpush3.bf16.xpose.msra.mxu0 %v1719_v0  ;;  %v524_v0 = vsub.f32 %v2504_v38, %v523_v13  ;;  %v532_v38 = vand.u32 4294901760, %v531_v17 }
 0x180   :  { %1818 = vmatpush3.bf16.xpose.msra.mxu1 %v1815_v1  ;;  %1724 = vmatprep.subr.bf16.mxu0 %v1723_v18 }
 0x181   :  { %1820 = vmatprep.subr.bf16.mxu1 %v1819_v47  ;;  %v525_v1 = vand.u32 4294901760, %v524_v0 }
 0x183   :  { %v1739_v44 = vpack.c.bf16 %v525_v1, %v518_v35 }
 0x187   :  { %1726 = vmatpush3.bf16.xpose.msra.mxu0 %v1723_v18  ;;  %v538_v18 = vsub.f32 %v2508_v42, %v537_v41 }
 0x188   :  { %1822 = vmatpush3.bf16.xpose.msra.mxu1 %v1819_v47  ;;  %1728 = vmatprep.subr.bf16.mxu0 %v1727_v6  ;;  %v1839_v47 = vpack.c.bf16 %v537_v41, %v530_v16 }
 0x189   :  { %1824 = vmatprep.subr.bf16.mxu1 %v1823_v29  ;;  %v539_v8 = vand.u32 4294901760, %v538_v18 }
 0x18b   :  { %v1743_v28 = vpack.c.bf16 %v539_v8, %v532_v38 }
 0x18f   :  { %1730 = vmatpush3.bf16.xpose.msra.mxu0 %v1727_v6 }
 0x190   :  { %1826 = vmatpush3.bf16.xpose.msra.mxu1 %v1823_v29  ;;  %1732 = vmatprep.subr.bf16.mxu0 %v1731_v9 }
 0x191   :  { %1828 = vmatprep.subr.bf16.mxu1 %v1827_v31 }
 0x197   :  { %1734 = vmatpush3.bf16.xpose.msra.mxu0 %v1731_v9 }
 0x198   :  { %1830 = vmatpush3.bf16.xpose.msra.mxu1 %v1827_v31  ;;  %1736 = vmatprep.subr.bf16.mxu0 %v1735_v14 }
 0x199   :  { %1832 = vmatprep.subr.bf16.mxu1 %v1831_v33 }
 0x19f   :  { %1738 = vmatpush3.bf16.xpose.msra.mxu0 %v1735_v14 }
 0x1a0   :  { %1834 = vmatpush3.bf16.xpose.msra.mxu1 %v1831_v33  ;;  %1740 = vmatprep.subr.bf16.mxu0 %v1739_v44 }
 0x1a1   :  { %1836 = vmatprep.subr.bf16.mxu1 %v1835_v37 }
 0x1a7   :  { %1742 = vmatpush3.bf16.xpose.msra.mxu0 %v1739_v44 }
 0x1a8   :  { %1838 = vmatpush3.bf16.xpose.msra.mxu1 %v1835_v37  ;;  %1744 = vmatprep.subr.bf16.mxu0 %v1743_v28 }
 0x1a9   :  { %1840 = vmatprep.subr.bf16.mxu1 %v1839_v47 }
 0x1af   :  { %1746 = vmatpush3.bf16.xpose.msra.mxu0 %v1743_v28 }
 0x1b0   :  { %1842 = vmatpush3.bf16.xpose.msra.mxu1 %v1839_v47  ;;  %1748 = vmatprep.subr.bf16.mxu0 %v2512_v48 }
 0x1b1   :  { %1844 = vmatprep.subr.msk.bf16.mxu1 %vm2270_vm14, %v2056_v10 }
 0x1b6   :  { %1517 = vmatmul.mubr.f32.vlgmr.msra.gmra.mrb[2].mxu0 %v2594_v46 }
 0x1b7   :  { %1622 = vmatmul.mubr.f32.vlgmr.msra.gmra.mrb[0].mxu1 %v2594_v46  ;;  %1750 = vmatpush3.bf16.xpose.msra.mxu0 %v2512_v48 }
 0x1b8   :  { %1551 = vmatprep.mubr.f32.mxu0 %v2346_v53  ;;  %1846 = vmatpush3.bf16.xpose.msk.msra.mxu1 %vm2270_vm14, %v2056_v10 }
 0x1b9   :  { %1656 = vmatprep.mubr.f32.mxu1 %v2321_v51  ;;  %1752 = vmatprep.subr.bf16.mxu0 %v2516_v49 }
 0x1ba   :  { %1848 = vmatprep.subr.msk.bf16.mxu1 %vm2297_vm0, %v2056_v10 }
 0x1bf   :  { %1754 = vmatpush3.bf16.xpose.msra.mxu0 %v2516_v49 }
 0x1c0   :  { %1850 = vmatpush3.bf16.xpose.msk.msra.mxu1 %vm2297_vm0, %v2056_v10  ;;  %1756 = vmatprep.subr.bf16.mxu0 %v2520_v50 }
 0x1c1   :  { %1852 = vmatprep.subr.msk.bf16.mxu1 %vm2335_vm5, %v2056_v10 }
 0x1c7   :  { %1758 = vmatpush3.bf16.xpose.msra.mxu0 %v2520_v50 }
 0x1c8   :  { %1854 = vmatpush3.bf16.xpose.msk.msra.mxu1 %vm2335_vm5, %v2056_v10  ;;  %1760 = vmatprep.subr.bf16.mxu0 %v2524_v54 }
 0x1c9   :  { %1856 = vmatprep.subr.msk.bf16.mxu1 %vm2382_vm8, %v2056_v10 }
 0x1cf   :  { %1762 = vmatpush3.bf16.xpose.msra.mxu0 %v2524_v54 }
 0x1d0   :  { %1858 = vmatpush3.bf16.xpose.msk.msra.mxu1 %vm2382_vm8, %v2056_v10  ;;  %1764 = vmatprep.subr.bf16.mxu0 %v2528_v55 }
 0x1d1   :  { %1860 = vmatprep.subr.msk.bf16.mxu1 %vm2462_vm4, %v2056_v10 }
 0x1d6   :  { %v225_v43 = vpop.xlane.xlu0 %224 }
 0x1d7   :  { %1766 = vmatpush3.bf16.xpose.msra.mxu0 %v2528_v55  ;;  %v226_v45 = vrot.slane %v225_v43, 4 }
 0x1d8   :  { %1862 = vmatpush3.bf16.xpose.msk.msra.mxu1 %vm2462_vm4, %v2056_v10  ;;  %1768 = vmatprep.subr.bf16.mxu0 %v2532_v56 }
 0x1d9   :  { %1864 = vmatprep.subr.msk.bf16.mxu1 %vm2554_vm6, %v2056_v10  ;;  %v227_v51 = vadd.f32 %v226_v45, %v225_v43 }
 0x1db   :  { %v228_v52 = vrot.slane %v227_v51, 2 }
 0x1dd   :  { %v229_v53 = vadd.f32 %v228_v52, %v227_v51 }
 0x1df   :  { %1770 = vmatpush3.bf16.xpose.msra.mxu0 %v2532_v56  ;;  %v230_v61 = vrot.slane %v229_v53, 1  ;;  %v62_v56 = vld [vmem:[#allocation5] sm:$0xff] }
 0x1e0   :  { %1866 = vmatpush3.bf16.xpose.msk.msra.mxu1 %vm2554_vm6, %v2056_v10  ;;  %1772 = vmatprep.subr.bf16.mxu0 %v2536_v57 }
 0x1e1   :  { %1868 = vmatprep.subr.msk.bf16.mxu1 %vm2582_vm11, %v2056_v10  ;;  %v231_v25 = vadd.f32 %v230_v61, %v229_v53 }
 0x1e3   :  { %1885 = vpush %v231_v25 }
 0x1e7   :  { %1774 = vmatpush3.bf16.xpose.msra.mxu0 %v2536_v57 }
 0x1e8   :  { %1870 = vmatpush3.bf16.xpose.msk.msra.mxu1 %vm2582_vm11, %v2056_v10  ;;  %1776 = vmatprep.subr.bf16.mxu0 %v2540_v58 }
 0x1e9   :  { %1872 = vmatprep.subr.msk.bf16.mxu1 %vm2610_vm12, %v2056_v10 }
 0x1ef   :  { %1778 = vmatpush3.bf16.xpose.msra.mxu0 %v2540_v58 }
 0x1f0   :  { %1874 = vmatpush3.bf16.xpose.msk.msra.mxu1 %vm2610_vm12, %v2056_v10  ;;  %v1027_v10 = vmul.u32 128, %v2140_v2 }
 0x1f2   :  { %v1028_v40 = vadd.s32 %v1027_v10, %v2142_v3 }
 0x1f6   :  { %1552 = vmatmul.mubr.f32.vlgmr.msra.gmra.mrb[2].mxu0 %v2621_v62 }
 0x1f7   :  { %1657 = vmatmul.mubr.f32.vlgmr.msra.gmra.mrb[0].mxu1 %v2594_v46 }
 0x214   :  { %s1886_s0 = spop %1885 }
 0x215   :  { %p1887_p0 = scmp.lt.s32.totalorder %s1886_s0, 0  ;;  %s1888_s10 = sceil.f32 %s1886_s0 }
 0x216   :  { %s1889_s11 = sfloor.f32 %s1886_s0 }
 0x217   :  { %s2838_s10 = smov (!%p1887_p0, %s1888_s10), %s1889_s11 }
 0x218   :  { %s2732_s13 = scvt.f32.s32 %s2838_s10 }
 0x21a   :  { %s2735_s14 = sadd.s32 %s2732_s13, %s1174_s12  ;;  %s1016_s16 = sadd.s32 %s2732_s13, %s2241_s9 }
 0x21b   :  { %p1021_p1 = scmp.lt.s32.totalorder %s2735_s14, 1000  ;;  %p1017_p2 = scmp.ge.s32.totalorder %s1016_s16, 1000 }
 0x21c   :  { %s1276_s17 = sadd.s32 4294966296, %s1016_s16  ;;  %p1077_p3 = scmp.gt.s32.totalorder %s2732_s13, 0 }
 0x21d   :  { %s2739_s15 = scalar_select %p1021_p1, %s2735_s14, 1000 }
 0x21e   :  { %s2840_s17 = smov (!%p1017_p2, %s1276_s17), %s1016_s16 }
 0x21f   :  { %1111 = sst [smem:[#allocation16 + $0x1]] %s2739_s15  ;;  %s1033_s18 = scvt.s32.f32 %s2739_s15  ;;  %v1029_v42 = vstv %s2739_s15 }
 0x220   :  { %1108 = sst [smem:[#allocation16]] %s2840_s17  ;;  %vm1030_vm14 = vcmp.lt.s32.totalorder %v1028_v40, %v1029_v42 }
 0x221   :  { %s1278_s19 = sadd.f32 -1.0, %s1033_s18  ;;  %v1277_v59 = vsel %vm1030_vm14, 1.0, %v2055_v4  ;;  %s1044_s22 = smax.f32 %s2058_s20, %s1033_s18 }
 0x222   :  { %v1045_v3 = vstv %s1044_s22 }
 0x223   :  { %s2745_s21 = smax.f32 %s2058_s20, %s1278_s19  ;;  %1920 = vrcp.f32 %v1045_v3 }
 0x224   :  { %v1064_v30 = vstv %s2745_s21 }
 0x225   :  { %1922 = vrcp.f32 %v1064_v30 }
 0x22d   :  { %v1921_v39 = vpop.eup %1920 }
 0x22f   :  { %v1923_v31 = vpop.eup %1922 }
 0x2c9   :  { %v1553_v48 = vpop.f32.mrb[2].mxu0 }
 0x2ca   :  { %v1658_v49 = vpop.f32.mrb[0].mxu1  ;;  %v686_v50 = vpop.f32.mrb[3].mxu0 }
 0x2cb   :  { %v1875_v54 = vadd.f32 %v1658_v49, %v1553_v48  ;;  %v1002_v55 = vpop.f32.mrb[1].mxu1 }
 0x2cc   :  { %v1876_v57 = vadd.f32 %v1002_v55, %v686_v50 }
 0x2cd   :  { %vm1012_vm0 = vcmp.gt.f32.partialorder %v1875_v54, 0.5 }
 0x2ce   :  { %v1014_v58 = vsel %vm1012_vm0, %v1876_v57, %v62_v56 }
 0x2cf   :  { %v1034_v5 = vmul.f32 %v1277_v59, %v1014_v58  ;;  %1105 = vst [vmem:[#allocation14] sm:$0xff] %v1014_v58 }
 0x2d1   :  { %1035 = vadd.xlane.f32.xlu0 %v1034_v5 }
 0x35e   :  { %v1036_v2 = vpop.xlane.xlu0 %1035 }
 0x35f   :  { %v1037_v46 = vrot.slane %v1036_v2, 4 }
 0x361   :  { %v1038_v60 = vadd.f32 %v1037_v46, %v1036_v2 }
 0x363   :  { %v1039_v62 = vrot.slane %v1038_v60, 2 }
 0x365   :  { %v1040_v19 = vadd.f32 %v1039_v62, %v1038_v60 }
 0x367   :  { %v1041_v63 = vrot.slane %v1040_v19, 1 }
 0x369   :  { %v1042_v20 = vadd.f32 %v1041_v63, %v1040_v19 }
 0x36b   :  { %1894 = vpush %v1042_v20 }
 0x36c   :  { %1896 = vpush %v1921_v39 }
 0x39c   :  { %s1895_s23 = spop %1894 }
 0x39d   :  { %s1897_s24 = spop %1896 }
 0x39e   :  { %s1048_s25 = smul.f32 %s1897_s24, %s1895_s23 }
 0x3a0   :  { %v1049_v4 = vstv %s1048_s25  ;;  %s2842_s25 = smov (!%p1077_p3, %s1048_s25), %s70_s1 }
 0x3a1   :  { %v1050_v6 = vsub.f32 %v1014_v58, %v1049_v4  ;;  %1114 = sst [smem:[#allocation17]] %s2842_s25 }
 0x3a3   :  { %v1051_v7 = vmul.f32 %v1277_v59, %v1050_v6 }
 0x3a5   :  { %v1052_v22 = vmul.f32 %v1051_v7, %v1051_v7 }
 0x3a7   :  { %1053 = vadd.xlane.f32.xlu1 %v1052_v22 }
 0x434   :  { %v1054_v29 = vpop.xlane.xlu1 %1053 }
 0x435   :  { %v1055_v23 = vrot.slane %v1054_v29, 4 }
 0x437   :  { %v1056_v24 = vadd.f32 %v1055_v23, %v1054_v29 }
 0x439   :  { %v1057_v36 = vrot.slane %v1056_v24, 2 }
 0x43b   :  { %v1058_v9 = vadd.f32 %v1057_v36, %v1056_v24 }
 0x43d   :  { %v1059_v11 = vrot.slane %v1058_v9, 1 }
 0x43f   :  { %v1060_v12 = vadd.f32 %v1059_v11, %v1058_v9 }
 0x441   :  { %1898 = vpush %v1060_v12 }
 0x442   :  { %1900 = vpush %v1923_v31 }
 0x443   :  { %1983 = shalt.err (!%p1980_p8)
}
 0x444   :  { %s1984_s8 = scalar_lea.hbm %s2818_s5, 128 }
 0x445   :  { %p1985_p9 = scmp.ne.s32.totalorder %s2818_s5, %s1984_s8  ;;  %p1988_p10 = scmp.lt.u32.totalorder %s1984_s8, %s2818_s5 }
 0x447   :  { %p1990_p11 = pnand %p1988_p10, %p1985_p9 }
 0x449   :  { %1993 = shalt.err (!%p1990_p11)
}
 0x44a   :  { %1137 = dma.vmem_to_hbm [thread:$0]  %s1135_s27, 128, %s2818_s5, [#allocation15]  }
 0x44b   :  { %s1994_s16 = scalar_lea.hbm %s2819_s6, 16 }
 0x44c   :  { %p1995_p12 = scmp.ne.s32.totalorder %s2819_s6, %s1994_s16  ;;  %p1998_p13 = scmp.lt.u32.totalorder %s1994_s16, %s2819_s6 }
 0x44e   :  { %p2000_p0 = pnand %p1998_p13, %p1995_p12 }
 0x450   :  { %2003 = shalt.err (!%p2000_p0)
}
 0x451   :  { %s2060_s21 = smov [#allocation16]   ;;  %s1175_s26 = sld [smem:[#allocation11 + $0x1]] }
 0x452   :  { %1145 = dma.smem_to_hbm %s2060_s21, 16, %s2819_s6, [#allocation9]  }
 0x453   :  { %p1280_p1 = scmp.gt.s32.totalorder %s2735_s14, 1  ;;  %s2061_s28 = smov 1e-07  }
 0x454   :  { %s2004_s8 = scalar_lea.hbm %s2820_s7, 16 }
 0x455   :  { %p2005_p2 = scmp.ne.s32.totalorder %s2820_s7, %s2004_s8  ;;  %p2008_p4 = scmp.lt.u32.totalorder %s2004_s8, %s2820_s7 }
 0x457   :  { %p2010_p5 = pnand %p2008_p4, %p2005_p2 }
 0x472   :  { %s1899_s5 = spop %1898 }
 0x473   :  { %s1901_s23 = spop %1900 }
 0x474   :  { %s1067_s24 = smul.f32 %s1901_s23, %s1899_s5 }
 0x476   :  { %v1068_v32 = vstv %s1067_s24 }
 0x477   :  { %1924 = vrsqrt.f32 %v1068_v32  ;;  %vm1071_vm5 = vcmp.eq.f32.partialorder %v1068_v32, inf  ;;  %v1074_v13 = vand.u32 2147483648, %v1068_v32  ;;  %vm1073_vm8 = vcmp.eq.f32.partialorder %v1068_v32, 0.0 }
 0x481   :  { %v1925_v26 = vpop.eup %1924 }
 0x482   :  { %v1070_v27 = vmul.f32 %v1925_v26, %v1068_v32 }
 0x484   :  { %v1072_v14 = vsel %vm1071_vm5, %v1068_v32, %v1070_v27 }
 0x485   :  { %v1075_v15 = vsel %vm1073_vm8, %v1074_v13, %v1072_v14 }
 0x486   :  { %1902 = vpush %v1075_v15 }
 0x4b7   :  { %s1903_s27 = spop %1902 }
 0x4b8   :  { %s2844_s27 = smov (!%p1280_p1, %s1903_s27), %s1175_s26 }
 0x4b9   :  { %s1083_s6 = smax.f32 %s2061_s28, %s2844_s27 }
 0x4ba   :  { %s2846_s6 = smov (!%p1077_p3, %s1083_s6), %s1175_s26 }
 0x4bb   :  { %v1091_v0 = vstv %s2846_s6  ;;  %1117 = sst [smem:[#allocation17 + $0x1]] %s2846_s6 }
 0x4bc   :  { %1926 = vrcp.f32 %v1091_v0 }
 0x4bd   :  { %2013 = shalt.err (!%p2010_p5)
}
 0x4be   :  { %s2062_s14 = smov [#allocation17]   ;;  %v1089_v33 = vstv %s2842_s25  ;;  %s2063_s11 = smov [#allocation13]  }
 0x4bf   :  { %1153 = dma.smem_to_hbm %s2062_s14, 16, %s2820_s7, [#allocation18]   ;;  %v1090_v35 = vsub.f32 %v2245_v34, %v1089_v33 }
 0x4c0   :  { %s1124_s12 = sshll.u32 %s2063_s11, 4  ;;  %s1125_s12 = int_to_ptr.vmem [resolvable:$true] %s1124_s12 }
 0x4c1   :  { %s2014_s15 = scalar_lea.vmem %s1125_s12, 16  ;;  %s2018_s7 = scalar_lea.vmem %s1125_s12, 32 }
 0x4c2   :  { %p2015_p3 = scmp.ne.s32.totalorder %s1125_s12, %s2014_s15  ;;  %p2019_p6 = scmp.lt.s32.totalorder %s1125_s12, %s1125_s12 }
 0x4c3   :  { %p2020_p7 = scmp.lt.s32.totalorder %s2018_s7, %s2014_s15 }
 0x4c5   :  { %p2021_p8 = por %p2020_p7, %p2019_p6 }
 0x4c6   :  { %v1927_v1 = vpop.eup %1926 }
 0x4c7   :  { %v1093_v16 = vmul.f32 %v1927_v1, %v1090_v35  ;;  %p2022_p9 = pnand %p2021_p8, %p2015_p3 }
 0x4c9   :  { %v1094_v41 = vmul.f32 0.1967312, %v1093_v16 }
 0x4cb   :  { %v1095_v44 = vadd.f32 7.7813597, %v1094_v41 }
 0x4cd   :  { %v1096_v17 = vmul.f32 0.6931472, %v1095_v44 }
 0x4cf   :  { %v1097_v18 = vmul.f32 1.442695, %v1096_v17 }
 0x4d1   :  { %1928 = vpow2.f32 %v1097_v18 }
 0x4db   :  { %v1929_v37 = vpop.eup %1928 }
 0x4dc   :  { %v1099_v38 = vsel %vm77_vm9, %v1929_v37, 0.0 }
 0x4dd   :  { %1100 = vst [vmem:[#allocation13] sm:$0x1] %v1099_v38 }
 0x4de   :  { %2025 = shalt.err (!%p2022_p9)
}
 0x4df   :  { %s2026_s17 = scalar_lea.hbm %s2817_s4, 16 }
 0x4e0   :  { %p2027_p10 = scmp.ne.s32.totalorder %s2817_s4, %s2026_s17  ;;  %p2030_p11 = scmp.lt.u32.totalorder %s2026_s17, %s2817_s4 }
 0x4e2   :  { %p2032_p12 = pnand %p2030_p11, %p2027_p10 }
 0x4e4   :  { %2035 = shalt.err (!%p2032_p12)
}
 0x4e5   :  { %1127 = dma.vmem_to_hbm [thread:$0]  %s1125_s12, 16, %s2817_s4, [#allocation7]  }
 0x4e6   :  { %2042 = dma.done.wait [#allocation7], 16  }
 0x4e7   :  { %2043 = vsyncadd [#allocation7], 4294967280 }
 0x4e8   :  { %2044 = dma.done.wait [#allocation15], 128  }
 0x4e9   :  { %2045 = vsyncadd [#allocation15], 4294967168 }
 0x4ea   :  { %2046 = dma.done.wait [#allocation9], 16  }
 0x4eb   :  { %2047 = vsyncadd [#allocation9], 4294967280 }
 0x4ec   :  { %2048 = dma.done.wait [#allocation18], 16  }
 0x4ed   :  { %2049 = vsyncadd [#allocation18], 4294967280 }
 0x4ee   :  { %1166 = sfence }
 0x4ef   :  { %1167 = vsyncpa [#allocation6], 1 }
 0x4f0   :  { %1168 = vsyncpa [#allocation7], 1 }
 0x4f1   :  { %1169 = vsyncpa [#allocation15], 1 }
 0x4f2   :  { %1170 = vsyncpa [#allocation8], 1 }
 0x4f3   :  { %1171 = vsyncpa [#allocation12], 1 }
 0x4f4   :  { %1172 = vsyncpa [#allocation9], 1 }
 0x4f5   :  { %1173 = vsyncpa [#allocation18], 1 }

</bundles_post_ra>
